<compile_context>
chip_gen: v7x
topology: tpu7x:2x2x1
jax: 0.10.0
libtpu: 0.0.40
codegen_flags: <defaults>
</compile_context>

<pallas_src>
import functools

import jax
import jax.numpy as jnp
from jax.experimental import pallas as pl
from jax.experimental.pallas import tpu as pltpu


def _round_up(n, m):
    return ((n + m - 1) // m) * m


def pg_network_kernel(x_ref,
                      w1_ref, b1_ref,
                      w2_ref, b2_ref,
                      w3_ref, b3_ref,
                      w4_ref, b4_ref,
                      out_ref, *, action_dim):
    # fc1 + relu : bf16 matmul on the MXU (K = S_pad, tiny), f32 accumulate.
    h = jnp.dot(x_ref[...].astype(jnp.bfloat16), w1_ref[...],
                preferred_element_type=jnp.float32)
    h = jnp.maximum(h + b1_ref[...], 0.0)
    # fc2 + relu
    h = jnp.dot(h.astype(jnp.bfloat16), w2_ref[...],
                preferred_element_type=jnp.float32)
    h = jnp.maximum(h + b2_ref[...], 0.0)
    # fc3 + relu
    h = jnp.dot(h.astype(jnp.bfloat16), w3_ref[...],
                preferred_element_type=jnp.float32)
    h = jnp.maximum(h + b3_ref[...], 0.0)
    # fc4 : padded output columns get logit == -1e30 via the padded bias entries
    # (padded w4 columns are zero), so no explicit mask is needed.
    logits = jnp.dot(h.astype(jnp.bfloat16), w4_ref[...],
                     preferred_element_type=jnp.float32)
    logits = logits + b4_ref[...]
    # Softmax over the (padded) action axis in f32; padded columns contribute 0.
    m = jnp.max(logits, axis=-1, keepdims=True)
    e = jnp.exp(logits - m)
    denom = jnp.sum(e, axis=-1, keepdims=True)
    probs = e * pl.reciprocal(denom, approx=True)
    # Write back only the real action columns (lane-masked store; MXU dominates).
    out_ref[...] = probs[:, :action_dim]


def pg_network_forward(x, params, action_dim, tm=1024):
    """x: (B, state_dim) f32; params: padded dict of (w1,b1,...,w4,b4)."""
    B, state_dim = x.shape
    S_pad = params["w1"].shape[0]          # round_up(state_dim, 8)
    A_pad = params["w4"].shape[1]          # padded action width (128)

    # Tile sizing: bounded padding waste; >= 2 grid steps when the batch permits
    # so v7x megacore sharding (and DMA/compute overlap) has something to split.
    num_tiles = pl.cdiv(B, tm)
    if B >= 16:
        num_tiles = max(2, num_tiles)
    TM = _round_up(pl.cdiv(B, num_tiles), 8)
    num_tiles = pl.cdiv(B, TM)
    B_pad = num_tiles * TM

    # Only a small row pad (and, if state_dim % 8 != 0, a tiny column pad).
    if (B_pad != B) or (S_pad != state_dim):
        x_in = jnp.pad(x, ((0, B_pad - B), (0, S_pad - state_dim)))
    else:
        x_in = x

    kernel = functools.partial(pg_network_kernel, action_dim=action_dim)

    def weight_spec(d_in, d_out):
        return pl.BlockSpec((d_in, d_out), lambda i: (0, 0))  # resident in VMEM

    def bias_spec(d_out):
        return pl.BlockSpec((1, d_out), lambda i: (0, 0))     # resident in VMEM

    # Advisory cost estimate (padded problem).
    flops = 2 * B_pad * (S_pad * 128 + 128 * 128 + 128 * 128 + 128 * A_pad)
    weight_bytes = sum(int(params[k].size) * (2 if k.startswith("w") else 4)
                       for k in params)
    bytes_accessed = B_pad * S_pad * 4 + weight_bytes + B_pad * action_dim * 4

    out = pl.pallas_call(
        kernel,
        out_shape=jax.ShapeDtypeStruct((B_pad, action_dim), jnp.float32),
        grid=(num_tiles,),
        in_specs=[
            pl.BlockSpec((TM, S_pad), lambda i: (i, 0)),   # x tile (f32, unpadded cols)
            weight_spec(S_pad, 128), bias_spec(128),       # fc1
            weight_spec(128, 128), bias_spec(128),         # fc2
            weight_spec(128, 128), bias_spec(128),         # fc3
            weight_spec(128, A_pad), bias_spec(A_pad),     # fc4 (mask baked into b4)
        ],
        out_specs=pl.BlockSpec((TM, action_dim), lambda i: (i, 0)),
        compiler_params=pltpu.CompilerParams(
            dimension_semantics=("parallel",)),
        cost_estimate=pl.CostEstimate(
            flops=flops,
            transcendentals=B_pad * A_pad,
            bytes_accessed=bytes_accessed),
    )(x_in,
      params["w1"], params["b1"],
      params["w2"], params["b2"],
      params["w3"], params["b3"],
      params["w4"], params["b4"])

    # Strip batch padding only (action columns already exact).
    return out[:B] if B_pad != B else out


def init_params(key, state_dim, action_dim):
    """Mimics PGNetwork.initialize_weights: W ~ N(0, 0.1), b = 0.01.

    Weights are stored as (in_features, out_features) -- kernel computes x @ W + b
    (same semantics as nn.Linear).  Hidden widths are zero-padded to 128 and the
    action width to 128; padded rows/cols are zero so they are mathematically
    inert, except the padded entries of b4 which are -1e30 so padded logits are
    excluded from the softmax without any in-kernel masking.  Weights are bf16
    (MXU), biases stay f32.
    """
    S_pad = _round_up(state_dim, 8)
    a_pad = _round_up(action_dim, 128)
    raw_dims = [(state_dim, 128), (128, 64), (64, 32), (32, action_dim)]
    pad_dims = [(S_pad, 128), (128, 128), (128, 128), (128, a_pad)]

    params = {}
    keys = jax.random.split(key, len(raw_dims))
    for i, ((din, dout), (pin, pout), k) in enumerate(
            zip(raw_dims, pad_dims, keys), start=1):
        w = 0.1 * jax.random.normal(k, (din, dout), jnp.float32)
        w_p = jnp.zeros((pin, pout), jnp.float32).at[:din, :dout].set(w)
        if i == 4:
            b_p = jnp.full((1, pout), -1e30, jnp.float32).at[0, :dout].set(0.01)
        else:
            b_p = jnp.zeros((1, pout), jnp.float32).at[0, :dout].set(0.01)
        params[f"w{i}"] = w_p.astype(jnp.bfloat16)
        params[f"b{i}"] = b_p                      # bias stays f32
    return params


def reference_forward(x, params, action_dim):
    """Pure-JAX f32 reference using the same (padded, bf16-quantized) weights."""
    S_pad = params["w1"].shape[0]
    h = jnp.pad(x.astype(jnp.float32), ((0, 0), (0, S_pad - x.shape[1])))
    for i in range(1, 4):
        h = jnp.maximum(
            h @ params[f"w{i}"].astype(jnp.float32) + params[f"b{i}"], 0.0)
    logits = h @ params["w4"].astype(jnp.float32) + params["b4"]
    logits = logits[:, :action_dim]
    return jax.nn.softmax(logits, axis=-1)


if __name__ == "__main__":
    key = jax.random.PRNGKey(0)
    k_x, k_p = jax.random.split(key)

    batch = 2
    state_dim = 8
    action_dim = 4

    x = jax.random.normal(k_x, (batch, state_dim), jnp.float32)
    params = init_params(k_p, state_dim, action_dim)

    out = pg_network_forward(x, params, action_dim)
    out = jax.block_until_ready(out)

    # sanity: shape, softmax rows ~1 (approx reciprocal + bf16 -> loose tol),
    # and agreement with a pure-JAX reference using the same weights.
    assert out.shape == (batch, action_dim)
    assert jnp.allclose(jnp.sum(out, axis=-1), 1.0, atol=5e-3)
    ref = reference_forward(x, params, action_dim)
    assert jnp.allclose(out, ref, atol=3e-2, rtol=3e-2)

    print("KERNEL_OK")
</pallas_src>

<mosaic_0001>
module attributes {stable_mosaic.version = 11 : i64} {
  func.func @pg_network_kernel(%arg0: i32, %arg1: memref<8x8xf32, #tpu.memory_space<vmem>>, %arg2: memref<8x128xbf16, #tpu.memory_space<vmem>>, %arg3: memref<1x128xf32, #tpu.memory_space<vmem>>, %arg4: memref<128x128xbf16, #tpu.memory_space<vmem>>, %arg5: memref<1x128xf32, #tpu.memory_space<vmem>>, %arg6: memref<128x128xbf16, #tpu.memory_space<vmem>>, %arg7: memref<1x128xf32, #tpu.memory_space<vmem>>, %arg8: memref<128x128xbf16, #tpu.memory_space<vmem>>, %arg9: memref<1x128xf32, #tpu.memory_space<vmem>>, %arg10: memref<8x4xf32, #tpu.memory_space<vmem>>) attributes {dimension_semantics = [#tpu.dimension_semantics<parallel>], iteration_bounds = array<i64: 1>, scalar_prefetch = 0 : i64, scratch_operands = 0 : i64, tpu.core_type = #tpu.core_type<tc>, window_params = [{transform_indices = @transform_0, window_bounds = array<i64: 8, 8>}, {pipeline_mode = #tpu.pipeline_mode<synchronous>, transform_indices = @transform_1, window_bounds = array<i64: 8, 128>}, {pipeline_mode = #tpu.pipeline_mode<synchronous>, transform_indices = @transform_2, window_bounds = array<i64: 1, 128>}, {pipeline_mode = #tpu.pipeline_mode<synchronous>, transform_indices = @transform_3, window_bounds = array<i64: 128, 128>}, {pipeline_mode = #tpu.pipeline_mode<synchronous>, transform_indices = @transform_4, window_bounds = array<i64: 1, 128>}, {pipeline_mode = #tpu.pipeline_mode<synchronous>, transform_indices = @transform_5, window_bounds = array<i64: 128, 128>}, {pipeline_mode = #tpu.pipeline_mode<synchronous>, transform_indices = @transform_6, window_bounds = array<i64: 1, 128>}, {pipeline_mode = #tpu.pipeline_mode<synchronous>, transform_indices = @transform_7, window_bounds = array<i64: 128, 128>}, {pipeline_mode = #tpu.pipeline_mode<synchronous>, transform_indices = @transform_8, window_bounds = array<i64: 1, 128>}, {transform_indices = @transform_9, window_bounds = array<i64: 8, 4>}]} {
    %c0 = arith.constant 0 : index
    %c0_0 = arith.constant 0 : index
    %0 = vector.load %arg1[%c0, %c0_0] : memref<8x8xf32, #tpu.memory_space<vmem>>, vector<8x8xf32>
    %1 = arith.truncf %0 : vector<8x8xf32> to vector<8x8xbf16>
    %c0_1 = arith.constant 0 : index
    %c0_2 = arith.constant 0 : index
    %2 = vector.load %arg2[%c0_1, %c0_2] : memref<8x128xbf16, #tpu.memory_space<vmem>>, vector<8x128xbf16>
    %cst = arith.constant dense<0.000000e+00> : vector<8x128xf32>
    %3 = tpu.matmul %1, %2, %cst {dimension_numbers = #tpu.dot_dimension_numbers<[1], [0], [0], [1], [0, 0, 1, 1], [], []>} : vector<8x8xbf16>, vector<8x128xbf16>, vector<8x128xf32> -> vector<8x128xf32>
    %c0_3 = arith.constant 0 : index
    %c0_4 = arith.constant 0 : index
    %4 = vector.load %arg3[%c0_3, %c0_4] : memref<1x128xf32, #tpu.memory_space<vmem>>, vector<1x128xf32>
    %5 = vector.broadcast %4 : vector<1x128xf32> to vector<8x128xf32>
    %6 = arith.addf %3, %5 : vector<8x128xf32>
    %cst_5 = arith.constant 0.000000e+00 : f32
    %7 = vector.broadcast %cst_5 : f32 to vector<8x128xf32>
    %8 = arith.maximumf %6, %7 : vector<8x128xf32>
    %9 = arith.truncf %8 : vector<8x128xf32> to vector<8x128xbf16>
    %c0_6 = arith.constant 0 : index
    %c0_7 = arith.constant 0 : index
    %10 = vector.load %arg4[%c0_6, %c0_7] : memref<128x128xbf16, #tpu.memory_space<vmem>>, vector<128x128xbf16>
    %cst_8 = arith.constant dense<0.000000e+00> : vector<8x128xf32>
    %11 = tpu.matmul %9, %10, %cst_8 {dimension_numbers = #tpu.dot_dimension_numbers<[1], [0], [0], [1], [0, 0, 1, 1], [], []>} : vector<8x128xbf16>, vector<128x128xbf16>, vector<8x128xf32> -> vector<8x128xf32>
    %c0_9 = arith.constant 0 : index
    %c0_10 = arith.constant 0 : index
    %12 = vector.load %arg5[%c0_9, %c0_10] : memref<1x128xf32, #tpu.memory_space<vmem>>, vector<1x128xf32>
    %13 = vector.broadcast %12 : vector<1x128xf32> to vector<8x128xf32>
    %14 = arith.addf %11, %13 : vector<8x128xf32>
    %cst_11 = arith.constant 0.000000e+00 : f32
    %15 = vector.broadcast %cst_11 : f32 to vector<8x128xf32>
    %16 = arith.maximumf %14, %15 : vector<8x128xf32>
    %17 = arith.truncf %16 : vector<8x128xf32> to vector<8x128xbf16>
    %c0_12 = arith.constant 0 : index
    %c0_13 = arith.constant 0 : index
    %18 = vector.load %arg6[%c0_12, %c0_13] : memref<128x128xbf16, #tpu.memory_space<vmem>>, vector<128x128xbf16>
    %cst_14 = arith.constant dense<0.000000e+00> : vector<8x128xf32>
    %19 = tpu.matmul %17, %18, %cst_14 {dimension_numbers = #tpu.dot_dimension_numbers<[1], [0], [0], [1], [0, 0, 1, 1], [], []>} : vector<8x128xbf16>, vector<128x128xbf16>, vector<8x128xf32> -> vector<8x128xf32>
    %c0_15 = arith.constant 0 : index
    %c0_16 = arith.constant 0 : index
    %20 = vector.load %arg7[%c0_15, %c0_16] : memref<1x128xf32, #tpu.memory_space<vmem>>, vector<1x128xf32>
    %21 = vector.broadcast %20 : vector<1x128xf32> to vector<8x128xf32>
    %22 = arith.addf %19, %21 : vector<8x128xf32>
    %cst_17 = arith.constant 0.000000e+00 : f32
    %23 = vector.broadcast %cst_17 : f32 to vector<8x128xf32>
    %24 = arith.maximumf %22, %23 : vector<8x128xf32>
    %25 = arith.truncf %24 : vector<8x128xf32> to vector<8x128xbf16>
    %c0_18 = arith.constant 0 : index
    %c0_19 = arith.constant 0 : index
    %26 = vector.load %arg8[%c0_18, %c0_19] : memref<128x128xbf16, #tpu.memory_space<vmem>>, vector<128x128xbf16>
    %cst_20 = arith.constant dense<0.000000e+00> : vector<8x128xf32>
    %27 = tpu.matmul %25, %26, %cst_20 {dimension_numbers = #tpu.dot_dimension_numbers<[1], [0], [0], [1], [0, 0, 1, 1], [], []>} : vector<8x128xbf16>, vector<128x128xbf16>, vector<8x128xf32> -> vector<8x128xf32>
    %c0_21 = arith.constant 0 : index
    %c0_22 = arith.constant 0 : index
    %28 = vector.load %arg9[%c0_21, %c0_22] : memref<1x128xf32, #tpu.memory_space<vmem>>, vector<1x128xf32>
    %29 = vector.broadcast %28 : vector<1x128xf32> to vector<8x128xf32>
    %30 = arith.addf %27, %29 : vector<8x128xf32>
    %cst_23 = arith.constant dense<0xFF800000> : vector<8xf32>
    %31 = vector.multi_reduction <maximumf>, %30, %cst_23 [1] : vector<8x128xf32> to vector<8xf32>
    %32 = vector.shape_cast %31 : vector<8xf32> to vector<8x1xf32>
    %33 = vector.broadcast %32 : vector<8x1xf32> to vector<8x128xf32>
    %34 = arith.subf %30, %33 : vector<8x128xf32>
    %35 = math.exp %34 : vector<8x128xf32>
    %cst_24 = arith.constant dense<0.000000e+00> : vector<8xf32>
    %36 = vector.multi_reduction <add>, %35, %cst_24 [1] : vector<8x128xf32> to vector<8xf32>
    %37 = vector.shape_cast %36 : vector<8xf32> to vector<8x1xf32>
    %38 = tpu.reciprocal %37 {approx = true} : vector<8x1xf32> -> vector<8x1xf32>
    %39 = vector.broadcast %38 : vector<8x1xf32> to vector<8x128xf32>
    %40 = arith.mulf %35, %39 : vector<8x128xf32>
    %41 = vector.extract_strided_slice %40 {offsets = [0, 0], sizes = [8, 4], strides = [1, 1]} : vector<8x128xf32> to vector<8x4xf32>
    %c0_25 = arith.constant 0 : index
    %c0_26 = arith.constant 0 : index
    %42 = vector.load %arg10[%c0_25, %c0_26] : memref<8x4xf32, #tpu.memory_space<vmem>>, vector<8x4xf32>
    tpu.vector_store %arg10[%c0_25, %c0_26], %41 {strides = array<i32>} : memref<8x4xf32, #tpu.memory_space<vmem>>, vector<8x4xf32>,
    return
  }
  func.func @transform_0(%arg0: i32) -> (i32, i32) {
    %c0_i32 = arith.constant 0 : i32
    %c0_i32_0 = arith.constant 0 : i32
    return %arg0, %c0_i32 : i32, i32
  }
  func.func @transform_1(%arg0: i32) -> (i32, i32) {
    %c0_i32 = arith.constant 0 : i32
    %c0_i32_0 = arith.constant 0 : i32
    %c0_i32_1 = arith.constant 0 : i32
    return %c0_i32, %c0_i32_0 : i32, i32
  }
  func.func @transform_2(%arg0: i32) -> (i32, i32) {
    %c0_i32 = arith.constant 0 : i32
    %c0_i32_0 = arith.constant 0 : i32
    %c0_i32_1 = arith.constant 0 : i32
    return %c0_i32, %c0_i32_0 : i32, i32
  }
  func.func @transform_3(%arg0: i32) -> (i32, i32) {
    %c0_i32 = arith.constant 0 : i32
    %c0_i32_0 = arith.constant 0 : i32
    %c0_i32_1 = arith.constant 0 : i32
    return %c0_i32, %c0_i32_0 : i32, i32
  }
  func.func @transform_4(%arg0: i32) -> (i32, i32) {
    %c0_i32 = arith.constant 0 : i32
    %c0_i32_0 = arith.constant 0 : i32
    %c0_i32_1 = arith.constant 0 : i32
    return %c0_i32, %c0_i32_0 : i32, i32
  }
  func.func @transform_5(%arg0: i32) -> (i32, i32) {
    %c0_i32 = arith.constant 0 : i32
    %c0_i32_0 = arith.constant 0 : i32
    %c0_i32_1 = arith.constant 0 : i32
    return %c0_i32, %c0_i32_0 : i32, i32
  }
  func.func @transform_6(%arg0: i32) -> (i32, i32) {
    %c0_i32 = arith.constant 0 : i32
    %c0_i32_0 = arith.constant 0 : i32
    %c0_i32_1 = arith.constant 0 : i32
    return %c0_i32, %c0_i32_0 : i32, i32
  }
  func.func @transform_7(%arg0: i32) -> (i32, i32) {
    %c0_i32 = arith.constant 0 : i32
    %c0_i32_0 = arith.constant 0 : i32
    %c0_i32_1 = arith.constant 0 : i32
    return %c0_i32, %c0_i32_0 : i32, i32
  }
  func.func @transform_8(%arg0: i32) -> (i32, i32) {
    %c0_i32 = arith.constant 0 : i32
    %c0_i32_0 = arith.constant 0 : i32
    %c0_i32_1 = arith.constant 0 : i32
    return %c0_i32, %c0_i32_0 : i32, i32
  }
  func.func @transform_9(%arg0: i32) -> (i32, i32) {
    %c0_i32 = arith.constant 0 : i32
    %c0_i32_0 = arith.constant 0 : i32
    return %arg0, %c0_i32 : i32, i32
  }
}

</mosaic_0001>

<bundles_post_ra>
// kernel: tpu_custom_call.1
= control target key start
LH: loop header
LB: loop body
LE: loop exit
PB: predicated region body
PF: predicated region fallthrough
CT: control target
= control target key end

     0   :  { %14 = vsyncpa [#allocation3], 0  ;;  %s965_s0 = inlined_call_operand.hbm [shape: f32[8,8], index: 0, kind: input, shape index: {}]   ;;  %s966_s1 = inlined_call_operand.hbm [shape: bf16[8,128], index: 1, kind: input, shape index: {}]   ;;  %s967_s2 = inlined_call_operand.vmem [shape: f32[1,128], index: 2, kind: input, shape index: {}]   ;;  %s968_s3 = inlined_call_operand.hbm [shape: bf16[128,128], index: 3, kind: input, shape index: {}]   ;;  %s969_s4 = inlined_call_operand.vmem [shape: f32[1,128], index: 4, kind: input, shape index: {}]   ;;  %s970_s5 = inlined_call_operand.hbm [shape: bf16[128,128], index: 5, kind: input, shape index: {}]   ;;  %s971_s6 = inlined_call_operand.vmem [shape: f32[1,128], index: 6, kind: input, shape index: {}]   ;;  %s972_s7 = inlined_call_operand.hbm [shape: bf16[128,128], index: 7, kind: input, shape index: {}]   ;;  %s973_s8 = inlined_call_operand.vmem [shape: f32[1,128], index: 8, kind: input, shape index: {}]   ;;  %s974_s9 = inlined_call_operand.vmem [shape: f32[8,4], index: 9, kind: output, shape index: {}]  }
   0x1   :  { %15 = vsyncpa [#allocation5], 0 }
   0x2   :  { %16 = vsyncpa [#allocation8], 0  ;;  %s789_s30 = smov [#allocation4]   ;;  %s673_s13 = scalar_lea.hbm %s966_s1, 64 }
   0x3   :  { %s33_s10 = sshll.u32 %s789_s30, 4  ;;  %p674_p0 = scmp.ne.s32.totalorder %s966_s1, %s673_s13  ;;  %s34_s10 = int_to_ptr.vmem [resolvable:$true] %s33_s10 }
   0x4   :  { %p677_p1 = scmp.lt.u32.totalorder %s673_s13, %s966_s1 }
   0x6   :  { %p679_p2 = pnand %p677_p1, %p674_p0 }
   0x8   :  { %682 = shalt.err (!%p679_p2)
}
   0x9   :  { %s683_s18 = scalar_lea.vmem %s34_s10, 64  ;;  %p688_p4 = scmp.lt.s32.totalorder %s34_s10, %s34_s10 }
   0xa   :  { %p684_p3 = scmp.ne.s32.totalorder %s34_s10, %s683_s18  ;;  %p689_p5 = scmp.lt.s32.totalorder %s683_s18, %s683_s18 }
   0xc   :  { %p690_p6 = por %p689_p5, %p688_p4 }
   0xe   :  { %p691_p7 = pnand %p690_p6, %p684_p3 }
  0x10   :  { %694 = shalt.err (!%p691_p7)
}
  0x11   :  { %36 = dma.hbm_to_vmem [thread:$0]  %s966_s1, 64, %s34_s10, [#allocation5]  }
  0x12   :  { %s790_s21 = smov [#allocation7]   ;;  %s791_s23 = smov [#allocation2]  }
  0x13   :  { %s58_s22 = sshll.u32 %s790_s21, 4  ;;  %s23_s24 = sshll.u32 %s791_s23, 4  ;;  %s59_s22 = int_to_ptr.vmem [resolvable:$true] %s58_s22  ;;  %s24_s24 = int_to_ptr.vmem [resolvable:$true] %s23_s24 }
  0x14   :  { %s695_s27 = scalar_lea.hbm %s970_s5, 1024 }
  0x15   :  { %p696_p8 = scmp.ne.s32.totalorder %s970_s5, %s695_s27  ;;  %p699_p9 = scmp.lt.u32.totalorder %s695_s27, %s970_s5 }
  0x17   :  { %p701_p10 = pnand %p699_p9, %p696_p8 }
  0x19   :  { %704 = shalt.err (!%p701_p10)
}
  0x1a   :  { %s705_s1 = scalar_lea.vmem %s59_s22, 1024  ;;  %p710_p12 = scmp.lt.s32.totalorder %s59_s22, %s59_s22 }
  0x1b   :  { %p706_p11 = scmp.ne.s32.totalorder %s59_s22, %s705_s1  ;;  %p711_p13 = scmp.lt.s32.totalorder %s705_s1, %s705_s1 }
  0x1d   :  { %p712_p0 = por %p711_p13, %p710_p12 }
  0x1f   :  { %p713_p1 = pnand %p712_p0, %p706_p11 }
  0x21   :  { %716 = shalt.err (!%p713_p1)
}
  0x22   :  { %s792_s10 = smov 64   ;;  %s793_s12 = smov 4  }
  0x23   :  { %64 = dma.hbm_to_vmem [thread:$0]  %s970_s5, 1024, %s59_s22, [#allocation8], %s792_s10, %s792_s10, %s793_s12  }
  0x24   :  { %s717_s17 = scalar_lea.hbm %s965_s0, 128 }
  0x25   :  { %p718_p2 = scmp.ne.s32.totalorder %s965_s0, %s717_s17  ;;  %p721_p3 = scmp.lt.u32.totalorder %s717_s17, %s965_s0 }
  0x27   :  { %p723_p4 = pnand %p721_p3, %p718_p2 }
  0x29   :  { %726 = shalt.err (!%p723_p4)
}
  0x2a   :  { %s727_s23 = scalar_lea.vmem %s24_s24, 128  ;;  %p732_p6 = scmp.lt.s32.totalorder %s24_s24, %s24_s24 }
  0x2b   :  { %p728_p5 = scmp.ne.s32.totalorder %s24_s24, %s727_s23  ;;  %p733_p7 = scmp.lt.s32.totalorder %s727_s23, %s727_s23 }
  0x2d   :  { %p734_p8 = por %p733_p7, %p732_p6 }
  0x2f   :  { %p735_p9 = pnand %p734_p8, %p728_p5 }
  0x31   :  { %738 = shalt.err (!%p735_p9)
}
  0x32   :  { %26 = dma.hbm_to_vmem [thread:$0]  %s965_s0, 128, %s24_s24, [#allocation3]  }
  0x33   :  { %s794_s25 = smov [#allocation6]   ;;  %s795_s27 = smov [#allocation9]  }
  0x34   :  { %s44_s26 = sshll.u32 %s794_s25, 4  ;;  %s72_s28 = sshll.u32 %s795_s27, 4  ;;  %s45_s26 = int_to_ptr.vmem [resolvable:$true] %s44_s26  ;;  %s73_s28 = int_to_ptr.vmem [resolvable:$true] %s72_s28 }
  0x35   :  { %s739_s11 = scalar_lea.hbm %s968_s3, 1024 }
  0x36   :  { %p740_p10 = scmp.ne.s32.totalorder %s968_s3, %s739_s11  ;;  %p743_p11 = scmp.lt.u32.totalorder %s739_s11, %s968_s3 }
  0x38   :  { %p745_p12 = pnand %p743_p11, %p740_p10 }
  0x3a   :  { %748 = shalt.err (!%p745_p12)
}
  0x3b   :  { %s749_s0 = scalar_lea.vmem %s45_s26, 1024  ;;  %p754_p0 = scmp.lt.s32.totalorder %s45_s26, %s45_s26 }
  0x3c   :  { %p750_p13 = scmp.ne.s32.totalorder %s45_s26, %s749_s0  ;;  %p755_p1 = scmp.lt.s32.totalorder %s749_s0, %s749_s0 }
  0x3e   :  { %p756_p2 = por %p755_p1, %p754_p0 }
  0x40   :  { %p757_p3 = pnand %p756_p2, %p750_p13 }
  0x42   :  { %760 = shalt.err (!%p757_p3)
}
  0x43   :  { %50 = dma.hbm_to_vmem [thread:$0]  %s968_s3, 1024, %s45_s26, [#allocation5], %s792_s10, %s792_s10, %s793_s12  }
  0x44   :  { %s761_s19 = scalar_lea.hbm %s972_s7, 1024 }
  0x45   :  { %p762_p4 = scmp.ne.s32.totalorder %s972_s7, %s761_s19  ;;  %p765_p5 = scmp.lt.u32.totalorder %s761_s19, %s972_s7 }
  0x47   :  { %p767_p6 = pnand %p765_p5, %p762_p4 }
  0x49   :  { %770 = shalt.err (!%p767_p6)
}
  0x4a   :  { %s771_s22 = scalar_lea.vmem %s73_s28, 1024  ;;  %p776_p8 = scmp.lt.s32.totalorder %s73_s28, %s73_s28 }
  0x4b   :  { %p772_p7 = scmp.ne.s32.totalorder %s73_s28, %s771_s22  ;;  %p777_p9 = scmp.lt.s32.totalorder %s771_s22, %s771_s22 }
  0x4d   :  { %p778_p10 = por %p777_p9, %p776_p8 }
  0x4f   :  { %p779_p11 = pnand %p778_p10, %p772_p7 }
  0x51   :  { %782 = shalt.err (!%p779_p11)
}
  0x52   :  { %78 = dma.hbm_to_vmem [thread:$0]  %s972_s7, 1024, %s73_s28, [#allocation8], %s792_s10, %s792_s10, %s793_s12  }
  0x53   :  { %783 = dma.done.wait [#allocation3], 128  }
  0x54   :  { %784 = vsyncadd [#allocation3], 4294967168 }
  0x55   :  { %785 = dma.done.wait [#allocation5], 1088  }
  0x56   :  { %786 = vsyncadd [#allocation5], 4294966208 }
  0x57   :  { %787 = dma.done.wait [#allocation8], 2048  }
  0x58   :  { %788 = vsyncadd [#allocation8], 4294965248  ;;  %v796_v0 = vmov 0.0   ;;  %vm797_vm0 = vmmov 0   ;;  %vm111_vm1 = vcmask 1043456   ;;  %v97_v2 = vld [vmem:[#allocation2] sm:$0xff] }
  0x59   :  { %570 = vmatprep.subr.bf16.mxu0 %v796_v0  ;;  %572 = vmatprep.mubr.msk.bf16.mxu0 %vm797_vm0, %v796_v0  ;;  %v99_v1 = vld [vmem:[#allocation4] sm:$0xf]  ;;  %v98_v4 = vpack.c.bf16 %v97_v2, %v97_v2  ;;  %v645_v5 = vld [vmem:[#allocation6] sm:$0xff]   ;;  %vm107_vm2 = vcmask 64512   ;;  %v646_v6 = vld [vmem:[#allocation6 + $0x8] sm:$0xff]   ;;  %vm503_vm3 = vcmask 31744  }
  0x5a   :  { %576 = vmatprep.subr.bf16.mxu1 %v796_v0  ;;  %592 = vmatprep.mubr.msk.bf16.mxu1 %vm797_vm0, %v796_v0  ;;  %v113_v3 = vsel %vm111_vm1, %v99_v1, 0  ;;  %v647_v7 = vld [vmem:[#allocation6 + $0x10] sm:$0xff]   ;;  %v648_v8 = vld [vmem:[#allocation6 + $0x18] sm:$0xff]   ;;  %v649_v9 = vld [vmem:[#allocation6 + $0x20] sm:$0xff]  }
  0x5b   :  { %571 = vmatpush3.bf16.msra.mxu0 %v113_v3  ;;  %577 = vmatpush3.bf16.msra.mxu1 %v645_v5  ;;  %v650_v10 = vld [vmem:[#allocation6 + $0x28] sm:$0xff]   ;;  %v651_v11 = vld [vmem:[#allocation6 + $0x30] sm:$0xff]   ;;  %v652_v12 = vld [vmem:[#allocation6 + $0x38] sm:$0xff]  }
  0x5c   :  { %596 = vmatprep.subr.bf16.mxu0 %v796_v0  ;;  %578 = vmatprep.subr.bf16.mxu1 %v796_v0  ;;  %v653_v13 = vld [vmem:[#allocation7] sm:$0xff]   ;;  %v654_v14 = vld [vmem:[#allocation7 + $0x8] sm:$0xff]   ;;  %v655_v15 = vld [vmem:[#allocation7 + $0x10] sm:$0xff]  }
  0x5d   :  { %v656_v16 = vld [vmem:[#allocation7 + $0x18] sm:$0xff]   ;;  %v657_v17 = vld [vmem:[#allocation7 + $0x20] sm:$0xff]   ;;  %v658_v18 = vld [vmem:[#allocation7 + $0x28] sm:$0xff]  }
  0x5e   :  { %573 = vmatmul.mubr.msk.bf16.vlgmr.msra.gmra.mrb[0].mxu0 %vm107_vm2, %v98_v4  ;;  %v512_v19 = vld [vmem:[%s967_s2] ss:$0 sm:$0xff]  ;;  %v659_v27 = vld [vmem:[#allocation7 + $0x30] sm:$0xff]   ;;  %v660_v28 = vld [vmem:[#allocation7 + $0x38] sm:$0xff]  }
  0x5f   :  { %612 = vmatprep.mubr.msk.bf16.mxu0 %vm797_vm0, %v796_v0  ;;  %579 = vmatpush3.bf16.msra.mxu1 %v646_v6  ;;  %v661_v29 = vld [vmem:[#allocation9] sm:$0xff]   ;;  %v662_v30 = vld [vmem:[#allocation9 + $0x8] sm:$0xff]   ;;  %v663_v31 = vld [vmem:[#allocation9 + $0x10] sm:$0xff]  }
  0x60   :  { %580 = vmatprep.subr.bf16.mxu1 %v796_v0  ;;  %597 = vmatpush3.bf16.msra.mxu0 %v653_v13  ;;  %v664_v32 = vld [vmem:[#allocation9 + $0x18] sm:$0xff]   ;;  %v665_v33 = vld [vmem:[#allocation9 + $0x20] sm:$0xff]   ;;  %v666_v34 = vld [vmem:[#allocation9 + $0x28] sm:$0xff]  }
  0x61   :  { %598 = vmatprep.subr.bf16.mxu0 %v796_v0  ;;  %v514_v35 = vld [vmem:[%s969_s4] ss:$0 sm:$0xff]  ;;  %v667_v43 = vld [vmem:[#allocation9 + $0x30] sm:$0xff]   ;;  %v668_v44 = vld [vmem:[#allocation9 + $0x38] sm:$0xff]  }
  0x62   :  { %v523_v45 = vld [vmem:[%s971_s6] ss:$0 sm:$0xff] }
  0x63   :  { %581 = vmatpush3.bf16.msra.mxu1 %v647_v7  ;;  %v532_v53 = vld [vmem:[%s973_s8] ss:$0 sm:$0xff] }
  0x64   :  { %582 = vmatprep.subr.bf16.mxu1 %v796_v0  ;;  %599 = vmatpush3.bf16.msra.mxu0 %v654_v14 }
  0x65   :  { %600 = vmatprep.subr.bf16.mxu0 %v796_v0 }
  0x67   :  { %583 = vmatpush3.bf16.msra.mxu1 %v648_v8 }
  0x68   :  { %584 = vmatprep.subr.bf16.mxu1 %v796_v0  ;;  %601 = vmatpush3.bf16.msra.mxu0 %v655_v15 }
  0x69   :  { %602 = vmatprep.subr.bf16.mxu0 %v796_v0 }
  0x6b   :  { %585 = vmatpush3.bf16.msra.mxu1 %v649_v9 }
  0x6c   :  { %586 = vmatprep.subr.bf16.mxu1 %v796_v0  ;;  %603 = vmatpush3.bf16.msra.mxu0 %v656_v16 }
  0x6d   :  { %604 = vmatprep.subr.bf16.mxu0 %v796_v0 }
  0x6f   :  { %587 = vmatpush3.bf16.msra.mxu1 %v650_v10 }
  0x70   :  { %588 = vmatprep.subr.bf16.mxu1 %v796_v0  ;;  %605 = vmatpush3.bf16.msra.mxu0 %v657_v17 }
  0x71   :  { %606 = vmatprep.subr.bf16.mxu0 %v796_v0 }
  0x73   :  { %589 = vmatpush3.bf16.msra.mxu1 %v651_v11 }
  0x74   :  { %590 = vmatprep.subr.bf16.mxu1 %v796_v0  ;;  %607 = vmatpush3.bf16.msra.mxu0 %v658_v18 }
  0x75   :  { %608 = vmatprep.subr.bf16.mxu0 %v796_v0 }
  0x77   :  { %591 = vmatpush3.bf16.msra.mxu1 %v652_v12 }
  0x78   :  { %616 = vmatprep.subr.bf16.mxu1 %v796_v0  ;;  %609 = vmatpush3.bf16.msra.mxu0 %v659_v27 }
  0x79   :  { %610 = vmatprep.subr.bf16.mxu0 %v796_v0 }
  0x7c   :  { %611 = vmatpush3.bf16.msra.mxu0 %v660_v28 }
 0x131   :  { %v149_v20 = vpop.f32.mrb[0].mxu0 }
 0x132   :  { %v150_v21 = vadd.f32 %v512_v19, %v149_v20  ;;  %v574_v22 = vpop.f32.mrb[1].mxu0 }
 0x133   :  { %v152_v23 = vpop.f32.mrb[2].mxu0 }
 0x134   :  { %v155_v24 = vmax.f32 %v150_v21, 0.0  ;;  %v575_v25 = vpop.f32.mrb[3].mxu0 }
 0x136   :  { %v156_v26 = vpack.c.bf16 %v155_v24, %v155_v24 }
 0x138   :  { %593 = vmatmul.mubr.bf16.vlgmr.msra.gmra.mrb[0].mxu1 %v156_v26 }
 0x139   :  { %632 = vmatprep.mubr.msk.bf16.mxu1 %vm797_vm0, %v796_v0  ;;  %617 = vmatpush3.bf16.msra.mxu1 %v661_v29 }
 0x13a   :  { %618 = vmatprep.subr.bf16.mxu1 %v796_v0 }
 0x13d   :  { %619 = vmatpush3.bf16.msra.mxu1 %v662_v30 }
 0x13e   :  { %620 = vmatprep.subr.bf16.mxu1 %v796_v0 }
 0x141   :  { %621 = vmatpush3.bf16.msra.mxu1 %v663_v31 }
 0x142   :  { %622 = vmatprep.subr.bf16.mxu1 %v796_v0 }
 0x145   :  { %623 = vmatpush3.bf16.msra.mxu1 %v664_v32 }
 0x146   :  { %624 = vmatprep.subr.bf16.mxu1 %v796_v0 }
 0x149   :  { %625 = vmatpush3.bf16.msra.mxu1 %v665_v33 }
 0x14a   :  { %626 = vmatprep.subr.bf16.mxu1 %v796_v0 }
 0x14d   :  { %627 = vmatpush3.bf16.msra.mxu1 %v666_v34 }
 0x14e   :  { %628 = vmatprep.subr.bf16.mxu1 %v796_v0 }
 0x151   :  { %629 = vmatpush3.bf16.msra.mxu1 %v667_v43 }
 0x152   :  { %630 = vmatprep.subr.bf16.mxu1 %v796_v0 }
 0x155   :  { %631 = vmatpush3.bf16.msra.mxu1 %v668_v44 }
 0x20b   :  { %v262_v36 = vpop.f32.mrb[0].mxu1 }
 0x20c   :  { %v263_v37 = vadd.f32 %v514_v35, %v262_v36  ;;  %v594_v38 = vpop.f32.mrb[1].mxu1 }
 0x20d   :  { %v265_v39 = vpop.f32.mrb[2].mxu1 }
 0x20e   :  { %v268_v40 = vmax.f32 %v263_v37, 0.0  ;;  %v595_v41 = vpop.f32.mrb[3].mxu1 }
 0x210   :  { %v269_v42 = vpack.c.bf16 %v268_v40, %v268_v40 }
 0x212   :  { %613 = vmatmul.mubr.bf16.vlgmr.msra.gmra.mrb[4].mxu0 %v269_v42 }
 0x2e5   :  { %v375_v46 = vpop.f32.mrb[4].mxu0 }
 0x2e6   :  { %v376_v47 = vadd.f32 %v523_v45, %v375_v46  ;;  %v614_v48 = vpop.f32.mrb[5].mxu0 }
 0x2e7   :  { %v378_v49 = vpop.f32.mrb[6].mxu0 }
 0x2e8   :  { %v381_v50 = vmax.f32 %v376_v47, 0.0  ;;  %v615_v51 = vpop.f32.mrb[7].mxu0 }
 0x2ea   :  { %v382_v52 = vpack.c.bf16 %v381_v50, %v381_v50 }
 0x2ec   :  { %633 = vmatmul.mubr.bf16.vlgmr.msra.gmra.mrb[4].mxu1 %v382_v52 }
 0x3bf   :  { %v488_v54 = vpop.f32.mrb[4].mxu1 }
 0x3c0   :  { %v489_v55 = vadd.f32 %v532_v53, %v488_v54  ;;  %v634_v56 = vpop.f32.mrb[5].mxu1 }
 0x3c1   :  { %v491_v57 = vpop.f32.mrb[6].mxu1 }
 0x3c2   :  { %494 = vmax.xlane.f32.xlu0 %v489_v55  ;;  %v635_v58 = vpop.f32.mrb[7].mxu1 }
 0x44f   :  { %v495_v59 = vpop.xlane.xlu0 %494 }
 0x450   :  { %v496_v60 = vsub.f32 %v489_v55, %v495_v59 }
 0x452   :  { %v497_v61 = vmul.f32 1.442695, %v496_v60 }
 0x454   :  { %669 = vpow2.f32 %v497_v61 }
 0x45e   :  { %v670_v62 = vpop.eup %669 }
 0x45f   :  { %499 = vadd.xlane.f32.xlu0 %v670_v62 }
 0x4ec   :  { %v500_v63 = vpop.xlane.xlu0 %499 }
 0x4ed   :  { %671 = vrcp.f32 %v500_v63 }
 0x4f7   :  { %v672_v0 = vpop.eup %671 }
 0x4f8   :  { %v502_v1 = vmul.f32 %v672_v0, %v670_v62 }
 0x4fa   :  { %504 = vst.msk [vmem:[%s974_s9] sm:$0xff] %vm503_vm3, %v502_v1 }
 0x4fb   :  { %509 = vsyncpa [#allocation3], 1 }
 0x4fc   :  { %510 = vsyncpa [#allocation5], 1 }
 0x4fd   :  { %511 = vsyncpa [#allocation8], 1 }

</bundles_post_ra>
